<compile_context>
chip_gen: v7x
topology: tpu7x:2x2x1
jax: 0.10.0
libtpu: 0.0.40
codegen_flags: <defaults>
</compile_context>

<pallas_src>
import functools
import math

import jax
import jax.numpy as jnp
from jax.experimental import pallas as pl
from jax.experimental.pallas import tpu as pltpu

W_SHAPE = (8, 10, 1024)


def _custom_add(a, b):
    # torch: return torch.add(input1, torch.add(input1, input2))
    return a + (a + b)


def add_chain_kernel(w_ref, w1_ref, o_ref):
    w = w_ref[...]
    w1 = w1_ref[...]
    # CSE'd version of the original 10-add chain (bit-identical, 7 VPU adds):
    #   t0   = w + w1            (== w1 + w, commutative)
    #   t1   = w + t0
    #   rtn  = w + t1            (== custom_add(w, w1 + w))
    #   rtn1 = w1 + (w1 + t1)    (== custom_add(w1, custom_add(w, w1)))
    #   out  = rtn + (rtn + rtn1)
    t0 = w + w1
    t1 = w + t0
    rtn = w + t1
    rtn1 = w1 + (w1 + t1)
    o_ref[...] = rtn + (rtn + rtn1)


@functools.lru_cache(maxsize=1)
def _default_num_blocks():
    # 2 parallel grid steps on multi-TensorCore chips (v7x) so each TC gets
    # half the rows; 1 block on single-TC chips (extra grid steps are pure
    # ~0.35us overhead there).
    try:
        info = pltpu.get_tpu_info()
        for attr in ("num_cores", "tensorcores_per_chip", "num_tensorcores"):
            n = getattr(info, attr, None)
            if isinstance(n, int) and n >= 2:
                return 2
    except Exception:
        pass
    try:
        kind = jax.devices()[0].device_kind.lower()
        if "v7" in kind:
            return 2
    except Exception:
        pass
    return 1


def _forward_impl(weight, weight1, num_blocks):
    B, R, C = weight.shape
    rows = B * R                      # 80: multiple of 8 sublanes
    block_rows = rows // num_blocks   # 80 or 40: still 8-sublane aligned

    # Lane/sublane-dense 2D slab: (8,10,1024) -> (80,1024). Contiguous
    # row-major reshape (metadata-only under jit); reshaped back after.
    w2 = weight.reshape(rows, C)
    w12 = weight1.reshape(rows, C)

    spec = pl.BlockSpec((block_rows, C), lambda i: (i, 0))
    out2 = pl.pallas_call(
        add_chain_kernel,
        out_shape=jax.ShapeDtypeStruct((rows, C), weight.dtype),
        grid=(num_blocks,),
        in_specs=[spec, spec],
        out_specs=spec,
        compiler_params=pltpu.CompilerParams(
            dimension_semantics=("parallel",)),
        cost_estimate=pl.CostEstimate(
            flops=7 * rows * C,
            transcendentals=0,
            bytes_accessed=3 * rows * C * weight.dtype.itemsize),
    )(w2, w12)
    return out2.reshape(B, R, C)


# Single jitted dispatch; num_blocks is static (affects grid/BlockSpec).
_jitted_forward = jax.jit(_forward_impl, static_argnums=(2,))


def custom_class_op_add(weight, weight1, *, num_blocks=None):
    B, R, C = weight.shape
    rows = B * R
    if num_blocks is None:
        num_blocks = _default_num_blocks()
        if rows % (num_blocks * 8) != 0:   # auto choice must stay aligned
            num_blocks = 1
    else:
        if num_blocks < 1 or rows % (num_blocks * 8) != 0:
            raise ValueError(
                f"num_blocks={num_blocks} does not divide rows={rows} into "
                f"8-sublane-aligned blocks")
    return _jitted_forward(weight, weight1, int(num_blocks))


def kaiming_uniform_init(key, shape, a=math.sqrt(5), dtype=jnp.float32):
    # Matches torch.nn.init.kaiming_uniform_ bound computation for a 3-D tensor:
    #   fan_in = shape[1] * prod(shape[2:]); gain = sqrt(2 / (1 + a^2))
    #   bound  = sqrt(3) * gain / sqrt(fan_in)
    fan_in = shape[1] * int(math.prod(shape[2:]))
    gain = math.sqrt(2.0 / (1.0 + a * a))
    bound = math.sqrt(3.0) * gain / math.sqrt(fan_in)
    return jax.random.uniform(key, shape, dtype=dtype, minval=-bound, maxval=bound)


def _reference_forward(weight, weight1):
    # Exact op ordering of the PyTorch forward (10 adds), in plain jnp.
    rtn = weight1 + weight
    rtn = _custom_add(weight, rtn)
    rtn1 = _custom_add(weight, weight1)
    rtn1 = _custom_add(weight1, rtn1)
    return _custom_add(rtn, rtn1)


if __name__ == "__main__":
    key = jax.random.PRNGKey(0)
    k_w, k_w1, k_x = jax.random.split(key, 3)

    # Deterministic parameter init (kaiming_uniform_ with a=sqrt(5), as in __init__).
    weight = kaiming_uniform_init(k_w, W_SHAPE)
    weight1 = kaiming_uniform_init(k_w1, W_SHAPE)

    # Forward's `input` argument is ignored by the module; construct it anyway.
    x = jax.random.normal(k_x, W_SHAPE, dtype=jnp.float32)
    del x  # unused, matching PyTorch forward semantics

    out = custom_class_op_add(weight, weight1)
    out = jax.block_until_ready(out)

    # Reference checks: exact op-order chain and the algebraic closed form.
    ref_chain = _reference_forward(weight, weight1)
    ref_closed = 8.0 * weight + 5.0 * weight1
    assert out.shape == W_SHAPE and out.dtype == jnp.float32
    assert jnp.allclose(out, ref_chain, rtol=1e-6, atol=1e-6)
    assert jnp.allclose(out, ref_closed, rtol=1e-5, atol=1e-5)

    print("KERNEL_OK")
</pallas_src>

<mosaic_0001>
module attributes {stable_mosaic.version = 11 : i64} {
  func.func @add_chain_kernel(%arg0: i32, %arg1: memref<80x1024xf32, #tpu.memory_space<vmem>>, %arg2: memref<80x1024xf32, #tpu.memory_space<vmem>>, %arg3: memref<80x1024xf32, #tpu.memory_space<vmem>>) attributes {dimension_semantics = [#tpu.dimension_semantics<parallel>], iteration_bounds = array<i64: 1>, scalar_prefetch = 0 : i64, scratch_operands = 0 : i64, tpu.core_type = #tpu.core_type<tc>, window_params = [{transform_indices = @transform_0, window_bounds = array<i64: 80, 1024>}, {transform_indices = @transform_1, window_bounds = array<i64: 80, 1024>}, {transform_indices = @transform_2, window_bounds = array<i64: 80, 1024>}]} {
    %c0 = arith.constant 0 : index
    %c0_0 = arith.constant 0 : index
    %0 = vector.load %arg1[%c0, %c0_0] : memref<80x1024xf32, #tpu.memory_space<vmem>>, vector<80x1024xf32>
    %c0_1 = arith.constant 0 : index
    %c0_2 = arith.constant 0 : index
    %1 = vector.load %arg2[%c0_1, %c0_2] : memref<80x1024xf32, #tpu.memory_space<vmem>>, vector<80x1024xf32>
    %2 = arith.addf %0, %1 : vector<80x1024xf32>
    %3 = arith.addf %0, %2 : vector<80x1024xf32>
    %4 = arith.addf %0, %3 : vector<80x1024xf32>
    %5 = arith.addf %1, %3 : vector<80x1024xf32>
    %6 = arith.addf %1, %5 : vector<80x1024xf32>
    %7 = arith.addf %4, %6 : vector<80x1024xf32>
    %8 = arith.addf %4, %7 : vector<80x1024xf32>
    %c0_3 = arith.constant 0 : index
    %c0_4 = arith.constant 0 : index
    %9 = vector.load %arg3[%c0_3, %c0_4] : memref<80x1024xf32, #tpu.memory_space<vmem>>, vector<80x1024xf32>
    tpu.vector_store %arg3[%c0_3, %c0_4], %8 {strides = array<i32>} : memref<80x1024xf32, #tpu.memory_space<vmem>>, vector<80x1024xf32>,
    return
  }
  func.func @transform_0(%arg0: i32) -> (i32, i32) {
    %c0_i32 = arith.constant 0 : i32
    %c0_i32_0 = arith.constant 0 : i32
    return %arg0, %c0_i32 : i32, i32
  }
  func.func @transform_1(%arg0: i32) -> (i32, i32) {
    %c0_i32 = arith.constant 0 : i32
    %c0_i32_0 = arith.constant 0 : i32
    return %arg0, %c0_i32 : i32, i32
  }
  func.func @transform_2(%arg0: i32) -> (i32, i32) {
    %c0_i32 = arith.constant 0 : i32
    %c0_i32_0 = arith.constant 0 : i32
    return %arg0, %c0_i32 : i32, i32
  }
}

</mosaic_0001>

<bundles_post_ra>
// kernel: _forward_impl.1
= control target key start
LH: loop header
LB: loop body
LE: loop exit
PB: predicated region body
PF: predicated region fallthrough
CT: control target
= control target key end

     0   :  { %s1555_s0 = inlined_call_operand.vmem [shape: f32[80,1024], index: 0, kind: input, shape index: {}]   ;;  %s1556_s1 = inlined_call_operand.vmem [shape: f32[80,1024], index: 1, kind: input, shape index: {}]   ;;  %s1557_s2 = inlined_call_operand.vmem [shape: f32[80,1024], index: 2, kind: output, shape index: {}]  }
   0x1   :  { %v11_v0 = vld [vmem:[%s1555_s0] sm:$0xff]  ;;  %v12_v2 = vld [vmem:[%s1555_s0 + $0x8] sm:$0xff]  ;;  %v13_v5 = vld [vmem:[%s1555_s0 + $0x10] sm:$0xff] }
   0x2   :  { %v91_v1 = vld [vmem:[%s1556_s1] sm:$0xff]  ;;  %v92_v4 = vld [vmem:[%s1556_s1 + $0x8] sm:$0xff]  ;;  %v93_v6 = vld [vmem:[%s1556_s1 + $0x10] sm:$0xff] }
   0x3   :  { %v171_v3 = vadd.f32 %v91_v1, %v11_v0  ;;  %v172_v7 = vadd.f32 %v92_v4, %v12_v2  ;;  %v173_v8 = vadd.f32 %v93_v6, %v13_v5  ;;  %v14_v9 = vld [vmem:[%s1555_s0 + $0x18] sm:$0xff]  ;;  %v15_v11 = vld [vmem:[%s1555_s0 + $0x20] sm:$0xff]  ;;  %v16_v15 = vld [vmem:[%s1555_s0 + $0x28] sm:$0xff] }
   0x4   :  { %v94_v10 = vld [vmem:[%s1556_s1 + $0x18] sm:$0xff]  ;;  %v95_v14 = vld [vmem:[%s1556_s1 + $0x20] sm:$0xff]  ;;  %v96_v16 = vld [vmem:[%s1556_s1 + $0x28] sm:$0xff] }
   0x5   :  { %v251_v12 = vadd.f32 %v171_v3, %v11_v0  ;;  %v174_v13 = vadd.f32 %v94_v10, %v14_v9  ;;  %v252_v17 = vadd.f32 %v172_v7, %v12_v2  ;;  %v253_v18 = vadd.f32 %v173_v8, %v13_v5  ;;  %v17_v21 = vld [vmem:[%s1555_s0 + $0x30] sm:$0xff]  ;;  %v18_v43 = vld [vmem:[%s1555_s0 + $0x38] sm:$0xff]  ;;  %v19_v49 = vld [vmem:[%s1555_s0 + $0x40] sm:$0xff] }
   0x6   :  { %v175_v19 = vadd.f32 %v95_v14, %v15_v11  ;;  %v176_v20 = vadd.f32 %v96_v16, %v16_v15  ;;  %v97_v22 = vld [vmem:[%s1556_s1 + $0x30] sm:$0xff]  ;;  %v98_v44 = vld [vmem:[%s1556_s1 + $0x38] sm:$0xff]  ;;  %v99_v50 = vld [vmem:[%s1556_s1 + $0x40] sm:$0xff] }
   0x7   :  { %v331_v23 = vadd.f32 %v251_v12, %v11_v0  ;;  %v411_v24 = vadd.f32 %v251_v12, %v91_v1  ;;  %v254_v25 = vadd.f32 %v174_v13, %v14_v9  ;;  %v177_v26 = vadd.f32 %v97_v22, %v17_v21  ;;  %v20_v51 = vld [vmem:[%s1555_s0 + $0x48] sm:$0xff]  ;;  %v21_v57 = vld [vmem:[%s1555_s0 + $0x50] sm:$0xff]  ;;  %v22_v63 = vld [vmem:[%s1555_s0 + $0x58] sm:$0xff] }
   0x8   :  { %v332_v27 = vadd.f32 %v252_v17, %v12_v2  ;;  %v412_v28 = vadd.f32 %v252_v17, %v92_v4  ;;  %v333_v29 = vadd.f32 %v253_v18, %v13_v5  ;;  %v413_v30 = vadd.f32 %v253_v18, %v93_v6  ;;  %v100_v56 = vld [vmem:[%s1556_s1 + $0x48] sm:$0xff]  ;;  %v101_v58 = vld [vmem:[%s1556_s1 + $0x50] sm:$0xff]  ;;  %v902_v0 = vld [vmem:[%s1556_s1 + $0x58] sm:$0xff] }
   0x9   :  { %v491_v31 = vadd.f32 %v411_v24, %v91_v1  ;;  %v334_v32 = vadd.f32 %v254_v25, %v14_v9  ;;  %v414_v33 = vadd.f32 %v254_v25, %v94_v10  ;;  %v255_v34 = vadd.f32 %v175_v19, %v15_v11  ;;  %v23_v17 = vld [vmem:[%s1555_s0 + $0x60] sm:$0xff]  ;;  %v24_v19 = vld [vmem:[%s1555_s0 + $0x68] sm:$0xff]  ;;  %v25_v25 = vld [vmem:[%s1555_s0 + $0x70] sm:$0xff] }
   0xa   :  { %v492_v35 = vadd.f32 %v412_v28, %v92_v4  ;;  %v493_v36 = vadd.f32 %v413_v30, %v93_v6  ;;  %v256_v37 = vadd.f32 %v176_v20, %v16_v15  ;;  %v257_v38 = vadd.f32 %v177_v26, %v17_v21  ;;  %v103_v18 = vld [vmem:[%s1556_s1 + $0x60] sm:$0xff]  ;;  %v104_v24 = vld [vmem:[%s1556_s1 + $0x68] sm:$0xff]  ;;  %v105_v26 = vld [vmem:[%s1556_s1 + $0x70] sm:$0xff] }
   0xb   :  { %v571_v39 = vadd.f32 %v491_v31, %v331_v23  ;;  %v494_v40 = vadd.f32 %v414_v33, %v94_v10  ;;  %v335_v41 = vadd.f32 %v255_v34, %v15_v11  ;;  %v415_v42 = vadd.f32 %v255_v34, %v95_v14 }
   0xc   :  { %v572_v45 = vadd.f32 %v492_v35, %v332_v27  ;;  %v573_v46 = vadd.f32 %v493_v36, %v333_v29  ;;  %v336_v47 = vadd.f32 %v256_v37, %v16_v15  ;;  %v416_v48 = vadd.f32 %v256_v37, %v96_v16 }
   0xd   :  { %v651_v52 = vadd.f32 %v571_v39, %v331_v23  ;;  %v574_v53 = vadd.f32 %v494_v40, %v334_v32  ;;  %v495_v54 = vadd.f32 %v415_v42, %v95_v14  ;;  %v337_v55 = vadd.f32 %v257_v38, %v17_v21 }
   0xe   :  { %v652_v59 = vadd.f32 %v572_v45, %v332_v27  ;;  %v653_v60 = vadd.f32 %v573_v46, %v333_v29  ;;  %v496_v61 = vadd.f32 %v416_v48, %v96_v16  ;;  %v417_v62 = vadd.f32 %v257_v38, %v97_v22  ;;  %v106_v48 = vld [vmem:[%s1556_s1 + $0x78] sm:$0xff] }
   0xf   :  { %731 = vst [vmem:[%s1557_s2] sm:$0xff] %v651_v52  ;;  %v654_v1 = vadd.f32 %v574_v53, %v334_v32  ;;  %v575_v2 = vadd.f32 %v495_v54, %v335_v41  ;;  %v178_v3 = vadd.f32 %v98_v44, %v18_v43  ;;  %v179_v4 = vadd.f32 %v99_v50, %v19_v49  ;;  %v27_v53 = vld [vmem:[%s1555_s0 + $0x80] sm:$0xff] }
  0x10   :  { %732 = vst [vmem:[%s1557_s2 + $0x8] sm:$0xff] %v652_v59  ;;  %733 = vst [vmem:[%s1557_s2 + $0x10] sm:$0xff] %v653_v60  ;;  %v576_v5 = vadd.f32 %v496_v61, %v336_v47  ;;  %v497_v6 = vadd.f32 %v417_v62, %v97_v22  ;;  %v180_v7 = vadd.f32 %v100_v56, %v20_v51  ;;  %v107_v54 = vld [vmem:[%s1556_s1 + $0x80] sm:$0xff]  ;;  %v108_v60 = vld [vmem:[%s1556_s1 + $0x88] sm:$0xff] }
  0x11   :  { %v181_v8 = vadd.f32 %v101_v58, %v21_v57  ;;  %734 = vst [vmem:[%s1557_s2 + $0x18] sm:$0xff] %v654_v1  ;;  %v655_v9 = vadd.f32 %v575_v2, %v335_v41  ;;  %v258_v10 = vadd.f32 %v178_v3, %v18_v43  ;;  %v259_v11 = vadd.f32 %v179_v4, %v19_v49  ;;  %v29_v61 = vld [vmem:[%s1555_s0 + $0x90] sm:$0xff] }
  0x12   :  { %v182_v12 = vadd.f32 %v902_v0, %v22_v63  ;;  %v656_v13 = vadd.f32 %v576_v5, %v336_v47  ;;  %v577_v14 = vadd.f32 %v497_v6, %v337_v55  ;;  %v260_v15 = vadd.f32 %v180_v7, %v20_v51  ;;  %v26_v47 = vld [vmem:[%s1555_s0 + $0x78] sm:$0xff]  ;;  %v109_v62 = vld [vmem:[%s1556_s1 + $0x90] sm:$0xff] }
  0x13   :  { %v261_v16 = vadd.f32 %v181_v8, %v21_v57  ;;  %735 = vst [vmem:[%s1557_s2 + $0x20] sm:$0xff] %v655_v9  ;;  %v338_v20 = vadd.f32 %v258_v10, %v18_v43  ;;  %v418_v21 = vadd.f32 %v258_v10, %v98_v44  ;;  %v339_v22 = vadd.f32 %v259_v11, %v19_v49 }
  0x14   :  { %v419_v23 = vadd.f32 %v259_v11, %v99_v50  ;;  %736 = vst [vmem:[%s1557_s2 + $0x28] sm:$0xff] %v656_v13  ;;  %v657_v27 = vadd.f32 %v577_v14, %v337_v55  ;;  %v340_v28 = vadd.f32 %v260_v15, %v20_v51  ;;  %v420_v29 = vadd.f32 %v260_v15, %v100_v56  ;;  %v28_v55 = vld [vmem:[%s1555_s0 + $0x88] sm:$0xff] }
  0x15   :  { %v341_v30 = vadd.f32 %v261_v16, %v21_v57  ;;  %v498_v31 = vadd.f32 %v418_v21, %v98_v44  ;;  %v421_v33 = vadd.f32 %v261_v16, %v101_v58  ;;  %v262_v34 = vadd.f32 %v182_v12, %v22_v63 }
  0x16   :  { %v499_v32 = vadd.f32 %v419_v23, %v99_v50  ;;  %737 = vst [vmem:[%s1557_s2 + $0x30] sm:$0xff] %v657_v27  ;;  %v500_v35 = vadd.f32 %v420_v29, %v100_v56  ;;  %v183_v36 = vadd.f32 %v103_v18, %v23_v17  ;;  %v184_v37 = vadd.f32 %v104_v24, %v24_v19  ;;  %v32_v27 = vld [vmem:[%s1555_s0 + $0xa8] sm:$0xff] }
  0x17   :  { %v185_v38 = vadd.f32 %v105_v26, %v25_v25  ;;  %v578_v39 = vadd.f32 %v498_v31, %v338_v20  ;;  %v501_v41 = vadd.f32 %v421_v33, %v101_v58  ;;  %v342_v42 = vadd.f32 %v262_v34, %v22_v63  ;;  %v33_v33 = vld [vmem:[%s1555_s0 + $0xb0] sm:$0xff] }
  0x18   :  { %v579_v40 = vadd.f32 %v499_v32, %v339_v22  ;;  %v580_v43 = vadd.f32 %v500_v35, %v340_v28  ;;  %v422_v45 = vadd.f32 %v262_v34, %v902_v0  ;;  %v263_v46 = vadd.f32 %v183_v36, %v23_v17  ;;  %v112_v32 = vld [vmem:[%s1556_s1 + $0xa8] sm:$0xff]  ;;  %v113_v34 = vld [vmem:[%s1556_s1 + $0xb0] sm:$0xff] }
  0x19   :  { %v264_v44 = vadd.f32 %v184_v37, %v24_v19  ;;  %v658_v49 = vadd.f32 %v578_v39, %v338_v20  ;;  %v581_v51 = vadd.f32 %v501_v41, %v341_v30  ;;  %v265_v52 = vadd.f32 %v185_v38, %v25_v25  ;;  %v110_v20 = vld [vmem:[%s1556_s1 + $0x98] sm:$0xff] }
  0x1a   :  { %v659_v50 = vadd.f32 %v579_v40, %v339_v22  ;;  %v660_v56 = vadd.f32 %v580_v43, %v340_v28  ;;  %v502_v57 = vadd.f32 %v422_v45, %v902_v0  ;;  %v343_v58 = vadd.f32 %v263_v46, %v23_v17 }
  0x1b   :  { %v423_v59 = vadd.f32 %v263_v46, %v103_v18  ;;  %738 = vst [vmem:[%s1557_s2 + $0x38] sm:$0xff] %v658_v49  ;;  %v661_v63 = vadd.f32 %v581_v51, %v341_v30  ;;  %v344_v0 = vadd.f32 %v264_v44, %v24_v19  ;;  %v424_v1 = vadd.f32 %v264_v44, %v104_v24 }
  0x1c   :  { %739 = vst [vmem:[%s1557_s2 + $0x40] sm:$0xff] %v659_v50  ;;  %v345_v2 = vadd.f32 %v265_v52, %v25_v25  ;;  %740 = vst [vmem:[%s1557_s2 + $0x48] sm:$0xff] %v660_v56  ;;  %v582_v3 = vadd.f32 %v502_v57, %v342_v42  ;;  %v425_v5 = vadd.f32 %v265_v52, %v105_v26  ;;  %v31_v25 = vld [vmem:[%s1555_s0 + $0xa0] sm:$0xff]  ;;  %v114_v56 = vld [vmem:[%s1556_s1 + $0xb8] sm:$0xff] }
  0x1d   :  { %v503_v4 = vadd.f32 %v423_v59, %v103_v18  ;;  %v186_v6 = vadd.f32 %v106_v48, %v26_v47  ;;  %741 = vst [vmem:[%s1557_s2 + $0x50] sm:$0xff] %v661_v63  ;;  %v504_v7 = vadd.f32 %v424_v1, %v104_v24  ;;  %v187_v8 = vadd.f32 %v107_v54, %v27_v53  ;;  %v30_v18 = vld [vmem:[%s1555_s0 + $0x98] sm:$0xff]  ;;  %v36_v63 = vld [vmem:[%s1555_s0 + $0xc8] sm:$0xff] }
  0x1e   :  { %v188_v9 = vadd.f32 %v108_v60, %v28_v55  ;;  %v189_v10 = vadd.f32 %v109_v62, %v29_v61  ;;  %v662_v11 = vadd.f32 %v582_v3, %v342_v42  ;;  %v505_v13 = vadd.f32 %v425_v5, %v105_v26  ;;  %v111_v26 = vld [vmem:[%s1556_s1 + $0xa0] sm:$0xff]  ;;  %v37_v5 = vld [vmem:[%s1555_s0 + $0xd0] sm:$0xff] }
  0x1f   :  { %v583_v12 = vadd.f32 %v503_v4, %v343_v58  ;;  %v266_v14 = vadd.f32 %v186_v6, %v26_v47  ;;  %v584_v15 = vadd.f32 %v504_v7, %v344_v0  ;;  %v267_v16 = vadd.f32 %v187_v8, %v27_v53  ;;  %v116_v4 = vld [vmem:[%s1556_s1 + $0xc8] sm:$0xff]  ;;  %v117_v6 = vld [vmem:[%s1556_s1 + $0xd0] sm:$0xff] }
  0x20   :  { %v268_v17 = vadd.f32 %v188_v9, %v28_v55  ;;  %v269_v19 = vadd.f32 %v189_v10, %v29_v61  ;;  %742 = vst [vmem:[%s1557_s2 + $0x58] sm:$0xff] %v662_v11  ;;  %v585_v22 = vadd.f32 %v505_v13, %v345_v2  ;;  %v190_v41 = vadd.f32 %v110_v20, %v30_v18 }
  0x21   :  { %v663_v21 = vadd.f32 %v583_v12, %v343_v58  ;;  %v346_v23 = vadd.f32 %v266_v14, %v26_v47  ;;  %v426_v24 = vadd.f32 %v266_v14, %v106_v48  ;;  %v664_v28 = vadd.f32 %v584_v15, %v344_v0 }
  0x22   :  { %v347_v29 = vadd.f32 %v267_v16, %v27_v53  ;;  %v427_v30 = vadd.f32 %v267_v16, %v107_v54  ;;  %v348_v31 = vadd.f32 %v268_v17, %v28_v55  ;;  %v665_v35 = vadd.f32 %v585_v22, %v345_v2 }
  0x23   :  { %743 = vst [vmem:[%s1557_s2 + $0x60] sm:$0xff] %v663_v21  ;;  %v506_v36 = vadd.f32 %v426_v24, %v106_v48  ;;  %v428_v37 = vadd.f32 %v268_v17, %v108_v60  ;;  %v349_v38 = vadd.f32 %v269_v19, %v29_v61  ;;  %744 = vst [vmem:[%s1557_s2 + $0x68] sm:$0xff] %v664_v28  ;;  %v35_v61 = vld [vmem:[%s1555_s0 + $0xc0] sm:$0xff]  ;;  %v118_v28 = vld [vmem:[%s1556_s1 + $0xd8] sm:$0xff] }
  0x24   :  { %v507_v39 = vadd.f32 %v427_v30, %v107_v54  ;;  %v429_v40 = vadd.f32 %v269_v19, %v109_v62  ;;  %v191_v42 = vadd.f32 %v111_v26, %v31_v25  ;;  %745 = vst [vmem:[%s1557_s2 + $0x70] sm:$0xff] %v665_v35  ;;  %v192_v46 = vadd.f32 %v112_v32, %v32_v27  ;;  %v34_v54 = vld [vmem:[%s1555_s0 + $0xb8] sm:$0xff]  ;;  %v40_v35 = vld [vmem:[%s1555_s0 + $0xe8] sm:$0xff] }
  0x25   :  { %v586_v43 = vadd.f32 %v506_v36, %v346_v23  ;;  %v508_v45 = vadd.f32 %v428_v37, %v108_v60  ;;  %v193_v44 = vadd.f32 %v113_v34, %v33_v33  ;;  %v270_v49 = vadd.f32 %v190_v41, %v30_v18  ;;  %v41_v41 = vld [vmem:[%s1555_s0 + $0xf0] sm:$0xff] }
  0x26   :  { %v587_v47 = vadd.f32 %v507_v39, %v347_v29  ;;  %v509_v48 = vadd.f32 %v429_v40, %v109_v62  ;;  %v271_v50 = vadd.f32 %v191_v42, %v31_v25  ;;  %v272_v53 = vadd.f32 %v192_v46, %v32_v27  ;;  %v115_v62 = vld [vmem:[%s1556_s1 + $0xc0] sm:$0xff]  ;;  %v120_v40 = vld [vmem:[%s1556_s1 + $0xe8] sm:$0xff]  ;;  %v121_v42 = vld [vmem:[%s1556_s1 + $0xf0] sm:$0xff] }
  0x27   :  { %v666_v51 = vadd.f32 %v586_v43, %v346_v23  ;;  %v588_v52 = vadd.f32 %v508_v45, %v348_v31  ;;  %v273_v55 = vadd.f32 %v193_v44, %v33_v33  ;;  %v350_v59 = vadd.f32 %v270_v49, %v30_v18 }
  0x28   :  { %v667_v57 = vadd.f32 %v587_v47, %v347_v29  ;;  %v589_v58 = vadd.f32 %v509_v48, %v349_v38  ;;  %v430_v60 = vadd.f32 %v270_v49, %v110_v20  ;;  %v351_v1 = vadd.f32 %v271_v50, %v31_v25 }
  0x29   :  { %746 = vst [vmem:[%s1557_s2 + $0x78] sm:$0xff] %v666_v51  ;;  %v668_v0 = vadd.f32 %v588_v52, %v348_v31  ;;  %v431_v2 = vadd.f32 %v271_v50, %v111_v26  ;;  %v352_v3 = vadd.f32 %v272_v53, %v32_v27  ;;  %v432_v9 = vadd.f32 %v272_v53, %v112_v32 }
  0x2a   :  { %747 = vst [vmem:[%s1557_s2 + $0x80] sm:$0xff] %v667_v57  ;;  %v669_v7 = vadd.f32 %v589_v58, %v349_v38  ;;  %v510_v8 = vadd.f32 %v430_v60, %v110_v20  ;;  %v353_v10 = vadd.f32 %v273_v55, %v33_v33  ;;  %v433_v12 = vadd.f32 %v273_v55, %v113_v34  ;;  %v39_v33 = vld [vmem:[%s1555_s0 + $0xe0] sm:$0xff] }
  0x2b   :  { %748 = vst [vmem:[%s1557_s2 + $0x88] sm:$0xff] %v668_v0  ;;  %v511_v11 = vadd.f32 %v431_v2, %v111_v26  ;;  %v194_v13 = vadd.f32 %v114_v56, %v34_v54  ;;  %v195_v14 = vadd.f32 %v115_v62, %v35_v61  ;;  %v512_v16 = vadd.f32 %v432_v9, %v112_v32  ;;  %v38_v26 = vld [vmem:[%s1555_s0 + $0xd8] sm:$0xff] }
  0x2c   :  { %749 = vst [vmem:[%s1557_s2 + $0x90] sm:$0xff] %v669_v7  ;;  %v590_v15 = vadd.f32 %v510_v8, %v350_v59  ;;  %v196_v17 = vadd.f32 %v116_v4, %v36_v63  ;;  %v197_v19 = vadd.f32 %v117_v6, %v37_v5  ;;  %v513_v20 = vadd.f32 %v433_v12, %v113_v34  ;;  %v119_v34 = vld [vmem:[%s1556_s1 + $0xe0] sm:$0xff]  ;;  %v122_v0 = vld [vmem:[%s1556_s1 + $0xf8] sm:$0xff]  ;;  %v44_v7 = vld [vmem:[%s1555_s0 + $0x108] sm:$0xff] }
  0x2d   :  { %v591_v18 = vadd.f32 %v511_v11, %v351_v1  ;;  %v274_v21 = vadd.f32 %v194_v13, %v34_v54  ;;  %v275_v22 = vadd.f32 %v195_v14, %v35_v61  ;;  %v592_v24 = vadd.f32 %v512_v16, %v352_v3  ;;  %v124_v12 = vld [vmem:[%s1556_s1 + $0x108] sm:$0xff]  ;;  %v45_v13 = vld [vmem:[%s1555_s0 + $0x110] sm:$0xff] }
  0x2e   :  { %v670_v23 = vadd.f32 %v590_v15, %v350_v59  ;;  %v276_v25 = vadd.f32 %v196_v17, %v36_v63  ;;  %v277_v27 = vadd.f32 %v197_v19, %v37_v5  ;;  %v593_v30 = vadd.f32 %v513_v20, %v353_v10  ;;  %v125_v14 = vld [vmem:[%s1556_s1 + $0x110] sm:$0xff] }
  0x2f   :  { %v671_v29 = vadd.f32 %v591_v18, %v351_v1  ;;  %v354_v31 = vadd.f32 %v274_v21, %v34_v54  ;;  %v434_v32 = vadd.f32 %v274_v21, %v114_v56  ;;  %v672_v36 = vadd.f32 %v592_v24, %v352_v3 }
  0x30   :  { %750 = vst [vmem:[%s1557_s2 + $0x98] sm:$0xff] %v670_v23  ;;  %v355_v37 = vadd.f32 %v275_v22, %v35_v61  ;;  %v435_v38 = vadd.f32 %v275_v22, %v115_v62  ;;  %v356_v39 = vadd.f32 %v276_v25, %v36_v63  ;;  %v673_v43 = vadd.f32 %v593_v30, %v353_v10 }
  0x31   :  { %751 = vst [vmem:[%s1557_s2 + $0xa0] sm:$0xff] %v671_v29  ;;  %v514_v45 = vadd.f32 %v434_v32, %v114_v56  ;;  %v436_v46 = vadd.f32 %v276_v25, %v116_v4  ;;  %v357_v44 = vadd.f32 %v277_v27, %v37_v5  ;;  %752 = vst [vmem:[%s1557_s2 + $0xa8] sm:$0xff] %v672_v36  ;;  %v43_v5 = vld [vmem:[%s1555_s0 + $0x100] sm:$0xff]  ;;  %v126_v36 = vld [vmem:[%s1556_s1 + $0x118] sm:$0xff] }
  0x32   :  { %v515_v47 = vadd.f32 %v435_v38, %v115_v62  ;;  %v437_v48 = vadd.f32 %v277_v27, %v117_v6  ;;  %v198_v49 = vadd.f32 %v118_v28, %v38_v26  ;;  %v199_v50 = vadd.f32 %v119_v34, %v39_v33  ;;  %753 = vst [vmem:[%s1557_s2 + $0xb0] sm:$0xff] %v673_v43  ;;  %v42_v62 = vld [vmem:[%s1555_s0 + $0xf8] sm:$0xff]  ;;  %v48_v43 = vld [vmem:[%s1555_s0 + $0x128] sm:$0xff] }
  0x33   :  { %v594_v51 = vadd.f32 %v514_v45, %v354_v31  ;;  %v516_v52 = vadd.f32 %v436_v46, %v116_v4  ;;  %v200_v53 = vadd.f32 %v120_v40, %v40_v35  ;;  %v201_v55 = vadd.f32 %v121_v42, %v41_v41 }
  0x34   :  { %v595_v54 = vadd.f32 %v515_v47, %v355_v37  ;;  %v517_v56 = vadd.f32 %v437_v48, %v117_v6  ;;  %v278_v57 = vadd.f32 %v198_v49, %v38_v26  ;;  %v279_v58 = vadd.f32 %v199_v50, %v39_v33  ;;  %v123_v6 = vld [vmem:[%s1556_s1 + $0x100] sm:$0xff]  ;;  %v128_v48 = vld [vmem:[%s1556_s1 + $0x128] sm:$0xff]  ;;  %v49_v49 = vld [vmem:[%s1555_s0 + $0x130] sm:$0xff] }
  0x35   :  { %v674_v59 = vadd.f32 %v594_v51, %v354_v31  ;;  %v596_v60 = vadd.f32 %v516_v52, %v356_v39  ;;  %v280_v61 = vadd.f32 %v200_v53, %v40_v35  ;;  %v281_v63 = vadd.f32 %v201_v55, %v41_v41  ;;  %v129_v50 = vld [vmem:[%s1556_s1 + $0x130] sm:$0xff] }
  0x36   :  { %v675_v1 = vadd.f32 %v595_v54, %v355_v37  ;;  %v597_v2 = vadd.f32 %v517_v56, %v357_v44  ;;  %v358_v3 = vadd.f32 %v278_v57, %v38_v26  ;;  %v438_v4 = vadd.f32 %v278_v57, %v118_v28 }
  0x37   :  { %754 = vst [vmem:[%s1557_s2 + $0xb8] sm:$0xff] %v674_v59  ;;  %v676_v8 = vadd.f32 %v596_v60, %v356_v39  ;;  %v359_v9 = vadd.f32 %v279_v58, %v39_v33  ;;  %v439_v10 = vadd.f32 %v279_v58, %v119_v34  ;;  %v360_v11 = vadd.f32 %v280_v61, %v40_v35 }
  0x38   :  { %755 = vst [vmem:[%s1557_s2 + $0xc0] sm:$0xff] %v675_v1  ;;  %v677_v15 = vadd.f32 %v597_v2, %v357_v44  ;;  %v518_v16 = vadd.f32 %v438_v4, %v118_v28  ;;  %v440_v17 = vadd.f32 %v280_v61, %v120_v40  ;;  %v361_v19 = vadd.f32 %v281_v63, %v41_v41  ;;  %v47_v41 = vld [vmem:[%s1555_s0 + $0x120] sm:$0xff] }
  0x39   :  { %756 = vst [vmem:[%s1557_s2 + $0xc8] sm:$0xff] %v676_v8  ;;  %v519_v18 = vadd.f32 %v439_v10, %v119_v34  ;;  %v441_v20 = vadd.f32 %v281_v63, %v121_v42  ;;  %v202_v21 = vadd.f32 %v122_v0, %v42_v62  ;;  %v203_v22 = vadd.f32 %v123_v6, %v43_v5  ;;  %v46_v34 = vld [vmem:[%s1555_s0 + $0x118] sm:$0xff] }
  0x3a   :  { %757 = vst [vmem:[%s1557_s2 + $0xd0] sm:$0xff] %v677_v15  ;;  %v598_v23 = vadd.f32 %v518_v16, %v358_v3  ;;  %v520_v24 = vadd.f32 %v440_v17, %v120_v40  ;;  %v204_v25 = vadd.f32 %v124_v12, %v44_v7  ;;  %v205_v27 = vadd.f32 %v125_v14, %v45_v13  ;;  %v130_v8 = vld [vmem:[%s1556_s1 + $0x138] sm:$0xff]  ;;  %v52_v15 = vld [vmem:[%s1555_s0 + $0x148] sm:$0xff] }
  0x3b   :  { %v599_v26 = vadd.f32 %v519_v18, %v359_v9  ;;  %v521_v28 = vadd.f32 %v441_v20, %v121_v42  ;;  %v282_v29 = vadd.f32 %v202_v21, %v42_v62  ;;  %v283_v30 = vadd.f32 %v203_v22, %v43_v5  ;;  %v127_v42 = vld [vmem:[%s1556_s1 + $0x120] sm:$0xff]  ;;  %v132_v20 = vld [vmem:[%s1556_s1 + $0x148] sm:$0xff]  ;;  %v53_v21 = vld [vmem:[%s1555_s0 + $0x150] sm:$0xff] }
  0x3c   :  { %v678_v31 = vadd.f32 %v598_v23, %v358_v3  ;;  %v600_v32 = vadd.f32 %v520_v24, %v360_v11  ;;  %v284_v33 = vadd.f32 %v204_v25, %v44_v7  ;;  %v285_v35 = vadd.f32 %v205_v27, %v45_v13  ;;  %v133_v22 = vld [vmem:[%s1556_s1 + $0x150] sm:$0xff] }
  0x3d   :  { %v679_v37 = vadd.f32 %v599_v26, %v359_v9  ;;  %v601_v38 = vadd.f32 %v521_v28, %v361_v19  ;;  %v362_v39 = vadd.f32 %v282_v29, %v42_v62  ;;  %v442_v40 = vadd.f32 %v282_v29, %v122_v0 }
  0x3e   :  { %758 = vst [vmem:[%s1557_s2 + $0xd8] sm:$0xff] %v678_v31  ;;  %v680_v45 = vadd.f32 %v600_v32, %v360_v11  ;;  %v363_v46 = vadd.f32 %v283_v30, %v43_v5  ;;  %v443_v44 = vadd.f32 %v283_v30, %v123_v6  ;;  %v364_v47 = vadd.f32 %v284_v33, %v44_v7 }
  0x3f   :  { %759 = vst [vmem:[%s1557_s2 + $0xe0] sm:$0xff] %v679_v37  ;;  %v681_v51 = vadd.f32 %v601_v38, %v361_v19  ;;  %v522_v52 = vadd.f32 %v442_v40, %v122_v0  ;;  %v444_v53 = vadd.f32 %v284_v33, %v124_v12  ;;  %v365_v55 = vadd.f32 %v285_v35, %v45_v13  ;;  %v51_v13 = vld [vmem:[%s1555_s0 + $0x140] sm:$0xff] }
  0x40   :  { %760 = vst [vmem:[%s1557_s2 + $0xe8] sm:$0xff] %v680_v45  ;;  %v523_v54 = vadd.f32 %v443_v44, %v123_v6  ;;  %v445_v56 = vadd.f32 %v285_v35, %v125_v14  ;;  %v206_v57 = vadd.f32 %v126_v36, %v46_v34  ;;  %v207_v58 = vadd.f32 %v127_v42, %v47_v41  ;;  %v50_v6 = vld [vmem:[%s1555_s0 + $0x138] sm:$0xff] }
  0x41   :  { %761 = vst [vmem:[%s1557_s2 + $0xf0] sm:$0xff] %v681_v51  ;;  %v602_v59 = vadd.f32 %v522_v52, %v362_v39  ;;  %v524_v60 = vadd.f32 %v444_v53, %v124_v12  ;;  %v208_v61 = vadd.f32 %v128_v48, %v48_v43  ;;  %v209_v63 = vadd.f32 %v129_v50, %v49_v49  ;;  %v134_v45 = vld [vmem:[%s1556_s1 + $0x158] sm:$0xff]  ;;  %v56_v51 = vld [vmem:[%s1555_s0 + $0x168] sm:$0xff] }
  0x42   :  { %v603_v62 = vadd.f32 %v523_v54, %v363_v46  ;;  %v525_v0 = vadd.f32 %v445_v56, %v125_v14  ;;  %v286_v1 = vadd.f32 %v206_v57, %v46_v34  ;;  %v287_v2 = vadd.f32 %v207_v58, %v47_v41  ;;  %v131_v14 = vld [vmem:[%s1556_s1 + $0x140] sm:$0xff]  ;;  %v136_v56 = vld [vmem:[%s1556_s1 + $0x168] sm:$0xff]  ;;  %v57_v57 = vld [vmem:[%s1555_s0 + $0x170] sm:$0xff] }
  0x43   :  { %v682_v3 = vadd.f32 %v602_v59, %v362_v39  ;;  %v604_v4 = vadd.f32 %v524_v60, %v364_v47  ;;  %v288_v5 = vadd.f32 %v208_v61, %v48_v43  ;;  %v289_v7 = vadd.f32 %v209_v63, %v49_v49  ;;  %v137_v58 = vld [vmem:[%s1556_s1 + $0x170] sm:$0xff] }
  0x44   :  { %v683_v9 = vadd.f32 %v603_v62, %v363_v46  ;;  %v605_v10 = vadd.f32 %v525_v0, %v365_v55  ;;  %v366_v11 = vadd.f32 %v286_v1, %v46_v34  ;;  %v446_v12 = vadd.f32 %v286_v1, %v126_v36 }
  0x45   :  { %762 = vst [vmem:[%s1557_s2 + $0xf8] sm:$0xff] %v682_v3  ;;  %v684_v16 = vadd.f32 %v604_v4, %v364_v47  ;;  %v367_v17 = vadd.f32 %v287_v2, %v47_v41  ;;  %v447_v19 = vadd.f32 %v287_v2, %v127_v42  ;;  %v368_v18 = vadd.f32 %v288_v5, %v48_v43 }
  0x46   :  { %763 = vst [vmem:[%s1557_s2 + $0x100] sm:$0xff] %v683_v9  ;;  %v685_v23 = vadd.f32 %v605_v10, %v365_v55  ;;  %v526_v24 = vadd.f32 %v446_v12, %v126_v36  ;;  %v448_v25 = vadd.f32 %v288_v5, %v128_v48  ;;  %v369_v27 = vadd.f32 %v289_v7, %v49_v49  ;;  %v55_v49 = vld [vmem:[%s1555_s0 + $0x160] sm:$0xff] }
  0x47   :  { %764 = vst [vmem:[%s1557_s2 + $0x108] sm:$0xff] %v684_v16  ;;  %v527_v26 = vadd.f32 %v447_v19, %v127_v42  ;;  %v449_v28 = vadd.f32 %v289_v7, %v129_v50  ;;  %v210_v29 = vadd.f32 %v130_v8, %v50_v6  ;;  %v211_v30 = vadd.f32 %v131_v14, %v51_v13  ;;  %v54_v42 = vld [vmem:[%s1555_s0 + $0x158] sm:$0xff] }
  0x48   :  { %765 = vst [vmem:[%s1557_s2 + $0x110] sm:$0xff] %v685_v23  ;;  %v606_v31 = vadd.f32 %v526_v24, %v366_v11  ;;  %v528_v32 = vadd.f32 %v448_v25, %v128_v48  ;;  %v212_v33 = vadd.f32 %v132_v20, %v52_v15  ;;  %v213_v35 = vadd.f32 %v133_v22, %v53_v21  ;;  %v138_v16 = vld [vmem:[%s1556_s1 + $0x178] sm:$0xff]  ;;  %v60_v23 = vld [vmem:[%s1555_s0 + $0x188] sm:$0xff] }
  0x49   :  { %v607_v34 = vadd.f32 %v527_v26, %v367_v17  ;;  %v529_v36 = vadd.f32 %v449_v28, %v129_v50  ;;  %v290_v37 = vadd.f32 %v210_v29, %v50_v6  ;;  %v291_v38 = vadd.f32 %v211_v30, %v51_v13  ;;  %v135_v50 = vld [vmem:[%s1556_s1 + $0x160] sm:$0xff]  ;;  %v140_v28 = vld [vmem:[%s1556_s1 + $0x188] sm:$0xff]  ;;  %v61_v29 = vld [vmem:[%s1555_s0 + $0x190] sm:$0xff] }
  0x4a   :  { %v686_v39 = vadd.f32 %v606_v31, %v366_v11  ;;  %v608_v40 = vadd.f32 %v528_v32, %v368_v18  ;;  %v292_v41 = vadd.f32 %v212_v33, %v52_v15  ;;  %v293_v43 = vadd.f32 %v213_v35, %v53_v21  ;;  %v141_v30 = vld [vmem:[%s1556_s1 + $0x190] sm:$0xff] }
  0x4b   :  { %v687_v46 = vadd.f32 %v607_v34, %v367_v17  ;;  %v609_v44 = vadd.f32 %v529_v36, %v369_v27  ;;  %v370_v47 = vadd.f32 %v290_v37, %v50_v6  ;;  %v450_v48 = vadd.f32 %v290_v37, %v130_v8 }
  0x4c   :  { %766 = vst [vmem:[%s1557_s2 + $0x118] sm:$0xff] %v686_v39  ;;  %v688_v52 = vadd.f32 %v608_v40, %v368_v18  ;;  %v371_v53 = vadd.f32 %v291_v38, %v51_v13  ;;  %v451_v55 = vadd.f32 %v291_v38, %v131_v14  ;;  %v372_v54 = vadd.f32 %v292_v41, %v52_v15 }
  0x4d   :  { %767 = vst [vmem:[%s1557_s2 + $0x120] sm:$0xff] %v687_v46  ;;  %v689_v59 = vadd.f32 %v609_v44, %v369_v27  ;;  %v530_v60 = vadd.f32 %v450_v48, %v130_v8  ;;  %v452_v61 = vadd.f32 %v292_v41, %v132_v20  ;;  %v373_v63 = vadd.f32 %v293_v43, %v53_v21  ;;  %v59_v21 = vld [vmem:[%s1555_s0 + $0x180] sm:$0xff] }
  0x4e   :  { %768 = vst [vmem:[%s1557_s2 + $0x128] sm:$0xff] %v688_v52  ;;  %v531_v62 = vadd.f32 %v451_v55, %v131_v14  ;;  %v453_v0 = vadd.f32 %v293_v43, %v133_v22  ;;  %v214_v1 = vadd.f32 %v134_v45, %v54_v42  ;;  %v215_v2 = vadd.f32 %v135_v50, %v55_v49  ;;  %v58_v14 = vld [vmem:[%s1555_s0 + $0x178] sm:$0xff] }
  0x4f   :  { %769 = vst [vmem:[%s1557_s2 + $0x130] sm:$0xff] %v689_v59  ;;  %v610_v3 = vadd.f32 %v530_v60, %v370_v47  ;;  %v532_v4 = vadd.f32 %v452_v61, %v132_v20  ;;  %v216_v5 = vadd.f32 %v136_v56, %v56_v51  ;;  %v217_v7 = vadd.f32 %v137_v58, %v57_v57  ;;  %v142_v52 = vld [vmem:[%s1556_s1 + $0x198] sm:$0xff]  ;;  %v64_v59 = vld [vmem:[%s1555_s0 + $0x1a8] sm:$0xff] }
  0x50   :  { %v611_v6 = vadd.f32 %v531_v62, %v371_v53  ;;  %v533_v8 = vadd.f32 %v453_v0, %v133_v22  ;;  %v294_v9 = vadd.f32 %v214_v1, %v54_v42  ;;  %v295_v10 = vadd.f32 %v215_v2, %v55_v49  ;;  %v139_v22 = vld [vmem:[%s1556_s1 + $0x180] sm:$0xff]  ;;  %v144_v0 = vld [vmem:[%s1556_s1 + $0x1a8] sm:$0xff]  ;;  %v65_v1 = vld [vmem:[%s1555_s0 + $0x1b0] sm:$0xff] }
  0x51   :  { %v690_v11 = vadd.f32 %v610_v3, %v370_v47  ;;  %v612_v12 = vadd.f32 %v532_v4, %v372_v54  ;;  %v296_v13 = vadd.f32 %v216_v5, %v56_v51  ;;  %v297_v15 = vadd.f32 %v217_v7, %v57_v57  ;;  %v145_v2 = vld [vmem:[%s1556_s1 + $0x1b0] sm:$0xff] }
  0x52   :  { %v691_v17 = vadd.f32 %v611_v6, %v371_v53  ;;  %v613_v19 = vadd.f32 %v533_v8, %v373_v63  ;;  %v374_v18 = vadd.f32 %v294_v9, %v54_v42  ;;  %v454_v20 = vadd.f32 %v294_v9, %v134_v45 }
  0x53   :  { %770 = vst [vmem:[%s1557_s2 + $0x138] sm:$0xff] %v690_v11  ;;  %v692_v24 = vadd.f32 %v612_v12, %v372_v54  ;;  %v375_v25 = vadd.f32 %v295_v10, %v55_v49  ;;  %v455_v27 = vadd.f32 %v295_v10, %v135_v50  ;;  %v376_v26 = vadd.f32 %v296_v13, %v56_v51 }
  0x54   :  { %771 = vst [vmem:[%s1557_s2 + $0x140] sm:$0xff] %v691_v17  ;;  %v693_v31 = vadd.f32 %v613_v19, %v373_v63  ;;  %v534_v32 = vadd.f32 %v454_v20, %v134_v45  ;;  %v456_v33 = vadd.f32 %v296_v13, %v136_v56  ;;  %v377_v35 = vadd.f32 %v297_v15, %v57_v57  ;;  %v63_v57 = vld [vmem:[%s1555_s0 + $0x1a0] sm:$0xff] }
  0x55   :  { %772 = vst [vmem:[%s1557_s2 + $0x148] sm:$0xff] %v692_v24  ;;  %v535_v34 = vadd.f32 %v455_v27, %v135_v50  ;;  %v457_v36 = vadd.f32 %v297_v15, %v137_v58  ;;  %v218_v37 = vadd.f32 %v138_v16, %v58_v14  ;;  %v219_v38 = vadd.f32 %v139_v22, %v59_v21  ;;  %v62_v50 = vld [vmem:[%s1555_s0 + $0x198] sm:$0xff] }
  0x56   :  { %773 = vst [vmem:[%s1557_s2 + $0x150] sm:$0xff] %v693_v31  ;;  %v614_v39 = vadd.f32 %v534_v32, %v374_v18  ;;  %v536_v40 = vadd.f32 %v456_v33, %v136_v56  ;;  %v220_v41 = vadd.f32 %v140_v28, %v60_v23  ;;  %v221_v43 = vadd.f32 %v141_v30, %v61_v29  ;;  %v146_v24 = vld [vmem:[%s1556_s1 + $0x1b8] sm:$0xff]  ;;  %v68_v31 = vld [vmem:[%s1555_s0 + $0x1c8] sm:$0xff] }
  0x57   :  { %v615_v42 = vadd.f32 %v535_v34, %v375_v25  ;;  %v537_v45 = vadd.f32 %v457_v36, %v137_v58  ;;  %v298_v46 = vadd.f32 %v218_v37, %v58_v14  ;;  %v299_v44 = vadd.f32 %v219_v38, %v59_v21  ;;  %v143_v58 = vld [vmem:[%s1556_s1 + $0x1a0] sm:$0xff]  ;;  %v148_v36 = vld [vmem:[%s1556_s1 + $0x1c8] sm:$0xff]  ;;  %v69_v37 = vld [vmem:[%s1555_s0 + $0x1d0] sm:$0xff] }
  0x58   :  { %v694_v47 = vadd.f32 %v614_v39, %v374_v18  ;;  %v616_v48 = vadd.f32 %v536_v40, %v376_v26  ;;  %v300_v49 = vadd.f32 %v220_v41, %v60_v23  ;;  %v301_v51 = vadd.f32 %v221_v43, %v61_v29  ;;  %v149_v38 = vld [vmem:[%s1556_s1 + $0x1d0] sm:$0xff] }
  0x59   :  { %v695_v53 = vadd.f32 %v615_v42, %v375_v25  ;;  %v617_v55 = vadd.f32 %v537_v45, %v377_v35  ;;  %v378_v54 = vadd.f32 %v298_v46, %v58_v14  ;;  %v458_v56 = vadd.f32 %v298_v46, %v138_v16 }
  0x5a   :  { %774 = vst [vmem:[%s1557_s2 + $0x158] sm:$0xff] %v694_v47  ;;  %v696_v60 = vadd.f32 %v616_v48, %v376_v26  ;;  %v379_v61 = vadd.f32 %v299_v44, %v59_v21  ;;  %v459_v63 = vadd.f32 %v299_v44, %v139_v22  ;;  %v380_v62 = vadd.f32 %v300_v49, %v60_v23 }
  0x5b   :  { %775 = vst [vmem:[%s1557_s2 + $0x160] sm:$0xff] %v695_v53  ;;  %v697_v3 = vadd.f32 %v617_v55, %v377_v35  ;;  %v538_v4 = vadd.f32 %v458_v56, %v138_v16  ;;  %v460_v5 = vadd.f32 %v300_v49, %v140_v28  ;;  %v381_v7 = vadd.f32 %v301_v51, %v61_v29  ;;  %v67_v29 = vld [vmem:[%s1555_s0 + $0x1c0] sm:$0xff] }
  0x5c   :  { %776 = vst [vmem:[%s1557_s2 + $0x168] sm:$0xff] %v696_v60  ;;  %v539_v6 = vadd.f32 %v459_v63, %v139_v22  ;;  %v461_v8 = vadd.f32 %v301_v51, %v141_v30  ;;  %v222_v9 = vadd.f32 %v142_v52, %v62_v50  ;;  %v223_v10 = vadd.f32 %v143_v58, %v63_v57  ;;  %v66_v22 = vld [vmem:[%s1555_s0 + $0x1b8] sm:$0xff] }
  0x5d   :  { %777 = vst [vmem:[%s1557_s2 + $0x170] sm:$0xff] %v697_v3  ;;  %v618_v11 = vadd.f32 %v538_v4, %v378_v54  ;;  %v540_v12 = vadd.f32 %v460_v5, %v140_v28  ;;  %v224_v13 = vadd.f32 %v144_v0, %v64_v59  ;;  %v225_v15 = vadd.f32 %v145_v2, %v65_v1  ;;  %v150_v60 = vld [vmem:[%s1556_s1 + $0x1d8] sm:$0xff]  ;;  %v72_v3 = vld [vmem:[%s1555_s0 + $0x1e8] sm:$0xff] }
  0x5e   :  { %v619_v14 = vadd.f32 %v539_v6, %v379_v61  ;;  %v541_v16 = vadd.f32 %v461_v8, %v141_v30  ;;  %v302_v17 = vadd.f32 %v222_v9, %v62_v50  ;;  %v303_v19 = vadd.f32 %v223_v10, %v63_v57  ;;  %v147_v30 = vld [vmem:[%s1556_s1 + $0x1c0] sm:$0xff]  ;;  %v152_v8 = vld [vmem:[%s1556_s1 + $0x1e8] sm:$0xff]  ;;  %v73_v9 = vld [vmem:[%s1555_s0 + $0x1f0] sm:$0xff] }
  0x5f   :  { %v698_v18 = vadd.f32 %v618_v11, %v378_v54  ;;  %v620_v20 = vadd.f32 %v540_v12, %v380_v62  ;;  %v304_v21 = vadd.f32 %v224_v13, %v64_v59  ;;  %v305_v23 = vadd.f32 %v225_v15, %v65_v1  ;;  %v153_v10 = vld [vmem:[%s1556_s1 + $0x1f0] sm:$0xff] }
  0x60   :  { %v699_v25 = vadd.f32 %v619_v14, %v379_v61  ;;  %v621_v27 = vadd.f32 %v541_v16, %v381_v7  ;;  %v382_v26 = vadd.f32 %v302_v17, %v62_v50  ;;  %v462_v28 = vadd.f32 %v302_v17, %v142_v52 }
  0x61   :  { %778 = vst [vmem:[%s1557_s2 + $0x178] sm:$0xff] %v698_v18  ;;  %v700_v32 = vadd.f32 %v620_v20, %v380_v62  ;;  %v383_v33 = vadd.f32 %v303_v19, %v63_v57  ;;  %v463_v35 = vadd.f32 %v303_v19, %v143_v58  ;;  %v384_v34 = vadd.f32 %v304_v21, %v64_v59 }
  0x62   :  { %779 = vst [vmem:[%s1557_s2 + $0x180] sm:$0xff] %v699_v25  ;;  %v701_v39 = vadd.f32 %v621_v27, %v381_v7  ;;  %v542_v40 = vadd.f32 %v462_v28, %v142_v52  ;;  %v464_v41 = vadd.f32 %v304_v21, %v144_v0  ;;  %v385_v43 = vadd.f32 %v305_v23, %v65_v1  ;;  %v71_v1 = vld [vmem:[%s1555_s0 + $0x1e0] sm:$0xff] }
  0x63   :  { %780 = vst [vmem:[%s1557_s2 + $0x188] sm:$0xff] %v700_v32  ;;  %v543_v42 = vadd.f32 %v463_v35, %v143_v58  ;;  %v465_v45 = vadd.f32 %v305_v23, %v145_v2  ;;  %v226_v46 = vadd.f32 %v146_v24, %v66_v22  ;;  %v227_v44 = vadd.f32 %v147_v30, %v67_v29  ;;  %v70_v58 = vld [vmem:[%s1555_s0 + $0x1d8] sm:$0xff] }
  0x64   :  { %781 = vst [vmem:[%s1557_s2 + $0x190] sm:$0xff] %v701_v39  ;;  %v622_v47 = vadd.f32 %v542_v40, %v382_v26  ;;  %v544_v48 = vadd.f32 %v464_v41, %v144_v0  ;;  %v228_v49 = vadd.f32 %v148_v36, %v68_v31  ;;  %v229_v51 = vadd.f32 %v149_v38, %v69_v37  ;;  %v154_v32 = vld [vmem:[%s1556_s1 + $0x1f8] sm:$0xff]  ;;  %v76_v39 = vld [vmem:[%s1555_s0 + $0x208] sm:$0xff] }
  0x65   :  { %v623_v50 = vadd.f32 %v543_v42, %v383_v33  ;;  %v545_v52 = vadd.f32 %v465_v45, %v145_v2  ;;  %v306_v53 = vadd.f32 %v226_v46, %v66_v22  ;;  %v307_v55 = vadd.f32 %v227_v44, %v67_v29  ;;  %v151_v2 = vld [vmem:[%s1556_s1 + $0x1e0] sm:$0xff]  ;;  %v156_v45 = vld [vmem:[%s1556_s1 + $0x208] sm:$0xff]  ;;  %v77_v46 = vld [vmem:[%s1555_s0 + $0x210] sm:$0xff] }
  0x66   :  { %v702_v54 = vadd.f32 %v622_v47, %v382_v26  ;;  %v624_v56 = vadd.f32 %v544_v48, %v384_v34  ;;  %v308_v57 = vadd.f32 %v228_v49, %v68_v31  ;;  %v309_v59 = vadd.f32 %v229_v51, %v69_v37  ;;  %v157_v44 = vld [vmem:[%s1556_s1 + $0x210] sm:$0xff] }
  0x67   :  { %v703_v61 = vadd.f32 %v623_v50, %v383_v33  ;;  %v625_v63 = vadd.f32 %v545_v52, %v385_v43  ;;  %v386_v62 = vadd.f32 %v306_v53, %v66_v22  ;;  %v466_v0 = vadd.f32 %v306_v53, %v146_v24 }
  0x68   :  { %782 = vst [vmem:[%s1557_s2 + $0x198] sm:$0xff] %v702_v54  ;;  %v704_v4 = vadd.f32 %v624_v56, %v384_v34  ;;  %v387_v5 = vadd.f32 %v307_v55, %v67_v29  ;;  %v467_v7 = vadd.f32 %v307_v55, %v147_v30  ;;  %v388_v6 = vadd.f32 %v308_v57, %v68_v31 }
  0x69   :  { %783 = vst [vmem:[%s1557_s2 + $0x1a0] sm:$0xff] %v703_v61  ;;  %v705_v11 = vadd.f32 %v625_v63, %v385_v43  ;;  %v546_v12 = vadd.f32 %v466_v0, %v146_v24  ;;  %v468_v13 = vadd.f32 %v308_v57, %v148_v36  ;;  %v389_v15 = vadd.f32 %v309_v59, %v69_v37  ;;  %v75_v37 = vld [vmem:[%s1555_s0 + $0x200] sm:$0xff] }
  0x6a   :  { %784 = vst [vmem:[%s1557_s2 + $0x1a8] sm:$0xff] %v704_v4  ;;  %v547_v14 = vadd.f32 %v467_v7, %v147_v30  ;;  %v469_v16 = vadd.f32 %v309_v59, %v149_v38  ;;  %v230_v17 = vadd.f32 %v150_v60, %v70_v58  ;;  %v231_v19 = vadd.f32 %v151_v2, %v71_v1  ;;  %v74_v30 = vld [vmem:[%s1555_s0 + $0x1f8] sm:$0xff] }
  0x6b   :  { %785 = vst [vmem:[%s1557_s2 + $0x1b0] sm:$0xff] %v705_v11  ;;  %v626_v18 = vadd.f32 %v546_v12, %v386_v62  ;;  %v548_v20 = vadd.f32 %v468_v13, %v148_v36  ;;  %v232_v21 = vadd.f32 %v152_v8, %v72_v3  ;;  %v233_v23 = vadd.f32 %v153_v10, %v73_v9  ;;  %v158_v4 = vld [vmem:[%s1556_s1 + $0x218] sm:$0xff]  ;;  %v80_v11 = vld [vmem:[%s1555_s0 + $0x228] sm:$0xff] }
  0x6c   :  { %v627_v22 = vadd.f32 %v547_v14, %v387_v5  ;;  %v549_v24 = vadd.f32 %v469_v16, %v149_v38  ;;  %v310_v25 = vadd.f32 %v230_v17, %v70_v58  ;;  %v311_v27 = vadd.f32 %v231_v19, %v71_v1  ;;  %v155_v38 = vld [vmem:[%s1556_s1 + $0x200] sm:$0xff]  ;;  %v160_v16 = vld [vmem:[%s1556_s1 + $0x228] sm:$0xff]  ;;  %v81_v17 = vld [vmem:[%s1555_s0 + $0x230] sm:$0xff] }
  0x6d   :  { %v706_v26 = vadd.f32 %v626_v18, %v386_v62  ;;  %v628_v28 = vadd.f32 %v548_v20, %v388_v6  ;;  %v312_v29 = vadd.f32 %v232_v21, %v72_v3  ;;  %v313_v31 = vadd.f32 %v233_v23, %v73_v9  ;;  %v161_v19 = vld [vmem:[%s1556_s1 + $0x230] sm:$0xff] }
  0x6e   :  { %v707_v33 = vadd.f32 %v627_v22, %v387_v5  ;;  %v629_v35 = vadd.f32 %v549_v24, %v389_v15  ;;  %v390_v34 = vadd.f32 %v310_v25, %v70_v58  ;;  %v470_v36 = vadd.f32 %v310_v25, %v150_v60 }
  0x6f   :  { %786 = vst [vmem:[%s1557_s2 + $0x1b8] sm:$0xff] %v706_v26  ;;  %v708_v40 = vadd.f32 %v628_v28, %v388_v6  ;;  %v391_v41 = vadd.f32 %v311_v27, %v71_v1  ;;  %v471_v43 = vadd.f32 %v311_v27, %v151_v2  ;;  %v392_v42 = vadd.f32 %v312_v29, %v72_v3 }
  0x70   :  { %787 = vst [vmem:[%s1557_s2 + $0x1c0] sm:$0xff] %v707_v33  ;;  %v709_v47 = vadd.f32 %v629_v35, %v389_v15  ;;  %v550_v48 = vadd.f32 %v470_v36, %v150_v60  ;;  %v472_v49 = vadd.f32 %v312_v29, %v152_v8  ;;  %v393_v51 = vadd.f32 %v313_v31, %v73_v9  ;;  %v79_v9 = vld [vmem:[%s1555_s0 + $0x220] sm:$0xff] }
  0x71   :  { %788 = vst [vmem:[%s1557_s2 + $0x1c8] sm:$0xff] %v708_v40  ;;  %v551_v50 = vadd.f32 %v471_v43, %v151_v2  ;;  %v473_v52 = vadd.f32 %v313_v31, %v153_v10  ;;  %v234_v53 = vadd.f32 %v154_v32, %v74_v30  ;;  %v235_v55 = vadd.f32 %v155_v38, %v75_v37  ;;  %v78_v2 = vld [vmem:[%s1555_s0 + $0x218] sm:$0xff] }
  0x72   :  { %789 = vst [vmem:[%s1557_s2 + $0x1d0] sm:$0xff] %v709_v47  ;;  %v630_v54 = vadd.f32 %v550_v48, %v390_v34  ;;  %v552_v56 = vadd.f32 %v472_v49, %v152_v8  ;;  %v236_v57 = vadd.f32 %v156_v45, %v76_v39  ;;  %v237_v59 = vadd.f32 %v157_v44, %v77_v46  ;;  %v162_v40 = vld [vmem:[%s1556_s1 + $0x238] sm:$0xff]  ;;  %v84_v47 = vld [vmem:[%s1555_s0 + $0x248] sm:$0xff] }
  0x73   :  { %v631_v58 = vadd.f32 %v551_v50, %v391_v41  ;;  %v553_v60 = vadd.f32 %v473_v52, %v153_v10  ;;  %v314_v61 = vadd.f32 %v234_v53, %v74_v30  ;;  %v315_v63 = vadd.f32 %v235_v55, %v75_v37  ;;  %v159_v10 = vld [vmem:[%s1556_s1 + $0x220] sm:$0xff]  ;;  %v164_v52 = vld [vmem:[%s1556_s1 + $0x248] sm:$0xff]  ;;  %v85_v53 = vld [vmem:[%s1555_s0 + $0x250] sm:$0xff] }
  0x74   :  { %v710_v62 = vadd.f32 %v630_v54, %v390_v34  ;;  %v632_v0 = vadd.f32 %v552_v56, %v392_v42  ;;  %v316_v1 = vadd.f32 %v236_v57, %v76_v39  ;;  %v317_v3 = vadd.f32 %v237_v59, %v77_v46  ;;  %v165_v55 = vld [vmem:[%s1556_s1 + $0x250] sm:$0xff] }
  0x75   :  { %v711_v5 = vadd.f32 %v631_v58, %v391_v41  ;;  %v633_v7 = vadd.f32 %v553_v60, %v393_v51  ;;  %v394_v6 = vadd.f32 %v314_v61, %v74_v30  ;;  %v474_v8 = vadd.f32 %v314_v61, %v154_v32 }
  0x76   :  { %790 = vst [vmem:[%s1557_s2 + $0x1d8] sm:$0xff] %v710_v62  ;;  %v712_v12 = vadd.f32 %v632_v0, %v392_v42  ;;  %v395_v13 = vadd.f32 %v315_v63, %v75_v37  ;;  %v475_v15 = vadd.f32 %v315_v63, %v155_v38  ;;  %v396_v14 = vadd.f32 %v316_v1, %v76_v39 }
  0x77   :  { %791 = vst [vmem:[%s1557_s2 + $0x1e0] sm:$0xff] %v711_v5  ;;  %v713_v18 = vadd.f32 %v633_v7, %v393_v51  ;;  %v554_v20 = vadd.f32 %v474_v8, %v154_v32  ;;  %v476_v21 = vadd.f32 %v316_v1, %v156_v45  ;;  %v397_v23 = vadd.f32 %v317_v3, %v77_v46  ;;  %v83_v46 = vld [vmem:[%s1555_s0 + $0x240] sm:$0xff] }
  0x78   :  { %792 = vst [vmem:[%s1557_s2 + $0x1e8] sm:$0xff] %v712_v12  ;;  %v555_v22 = vadd.f32 %v475_v15, %v155_v38  ;;  %v477_v24 = vadd.f32 %v317_v3, %v157_v44  ;;  %v238_v25 = vadd.f32 %v158_v4, %v78_v2  ;;  %v239_v27 = vadd.f32 %v159_v10, %v79_v9  ;;  %v82_v38 = vld [vmem:[%s1555_s0 + $0x238] sm:$0xff] }
  0x79   :  { %793 = vst [vmem:[%s1557_s2 + $0x1f0] sm:$0xff] %v713_v18  ;;  %v634_v26 = vadd.f32 %v554_v20, %v394_v6  ;;  %v556_v28 = vadd.f32 %v476_v21, %v156_v45  ;;  %v240_v29 = vadd.f32 %v160_v16, %v80_v11  ;;  %v241_v31 = vadd.f32 %v161_v19, %v81_v17  ;;  %v166_v12 = vld [vmem:[%s1556_s1 + $0x258] sm:$0xff]  ;;  %v88_v18 = vld [vmem:[%s1555_s0 + $0x268] sm:$0xff] }
  0x7a   :  { %v635_v30 = vadd.f32 %v555_v22, %v395_v13  ;;  %v557_v32 = vadd.f32 %v477_v24, %v157_v44  ;;  %v318_v33 = vadd.f32 %v238_v25, %v78_v2  ;;  %v319_v35 = vadd.f32 %v239_v27, %v79_v9  ;;  %v163_v44 = vld [vmem:[%s1556_s1 + $0x240] sm:$0xff]  ;;  %v168_v24 = vld [vmem:[%s1556_s1 + $0x268] sm:$0xff]  ;;  %v89_v25 = vld [vmem:[%s1555_s0 + $0x270] sm:$0xff] }
  0x7b   :  { %v714_v34 = vadd.f32 %v634_v26, %v394_v6  ;;  %v636_v36 = vadd.f32 %v556_v28, %v396_v14  ;;  %v320_v37 = vadd.f32 %v240_v29, %v80_v11  ;;  %v321_v39 = vadd.f32 %v241_v31, %v81_v17  ;;  %v169_v27 = vld [vmem:[%s1556_s1 + $0x270] sm:$0xff] }
  0x7c   :  { %v715_v41 = vadd.f32 %v635_v30, %v395_v13  ;;  %v637_v43 = vadd.f32 %v557_v32, %v397_v23  ;;  %v398_v42 = vadd.f32 %v318_v33, %v78_v2  ;;  %v478_v45 = vadd.f32 %v318_v33, %v158_v4 }
  0x7d   :  { %794 = vst [vmem:[%s1557_s2 + $0x1f8] sm:$0xff] %v714_v34  ;;  %v716_v48 = vadd.f32 %v636_v36, %v396_v14  ;;  %v399_v49 = vadd.f32 %v319_v35, %v79_v9  ;;  %v479_v51 = vadd.f32 %v319_v35, %v159_v10  ;;  %v400_v50 = vadd.f32 %v320_v37, %v80_v11 }
  0x7e   :  { %795 = vst [vmem:[%s1557_s2 + $0x200] sm:$0xff] %v715_v41  ;;  %v717_v54 = vadd.f32 %v637_v43, %v397_v23  ;;  %v558_v56 = vadd.f32 %v478_v45, %v158_v4  ;;  %v480_v57 = vadd.f32 %v320_v37, %v160_v16  ;;  %v401_v59 = vadd.f32 %v321_v39, %v81_v17  ;;  %v87_v17 = vld [vmem:[%s1555_s0 + $0x260] sm:$0xff] }
  0x7f   :  { %796 = vst [vmem:[%s1557_s2 + $0x208] sm:$0xff] %v716_v48  ;;  %v559_v58 = vadd.f32 %v479_v51, %v159_v10  ;;  %v481_v60 = vadd.f32 %v321_v39, %v161_v19  ;;  %v242_v61 = vadd.f32 %v162_v40, %v82_v38  ;;  %v243_v63 = vadd.f32 %v163_v44, %v83_v46  ;;  %v86_v10 = vld [vmem:[%s1555_s0 + $0x258] sm:$0xff] }
  0x80   :  { %797 = vst [vmem:[%s1557_s2 + $0x210] sm:$0xff] %v717_v54  ;;  %v638_v62 = vadd.f32 %v558_v56, %v398_v42  ;;  %v560_v0 = vadd.f32 %v480_v57, %v160_v16  ;;  %v244_v1 = vadd.f32 %v164_v52, %v84_v47  ;;  %v245_v3 = vadd.f32 %v165_v55, %v85_v53 }
  0x81   :  { %v639_v2 = vadd.f32 %v559_v58, %v399_v49  ;;  %v561_v4 = vadd.f32 %v481_v60, %v161_v19  ;;  %v322_v5 = vadd.f32 %v242_v61, %v82_v38  ;;  %v323_v7 = vadd.f32 %v243_v63, %v83_v46  ;;  %v167_v19 = vld [vmem:[%s1556_s1 + $0x260] sm:$0xff] }
  0x82   :  { %v718_v6 = vadd.f32 %v638_v62, %v398_v42  ;;  %v640_v8 = vadd.f32 %v560_v0, %v400_v50  ;;  %v324_v9 = vadd.f32 %v244_v1, %v84_v47  ;;  %v325_v11 = vadd.f32 %v245_v3, %v85_v53 }
  0x83   :  { %v719_v13 = vadd.f32 %v639_v2, %v399_v49  ;;  %v641_v15 = vadd.f32 %v561_v4, %v401_v59  ;;  %v402_v14 = vadd.f32 %v322_v5, %v82_v38  ;;  %v482_v16 = vadd.f32 %v322_v5, %v162_v40 }
  0x84   :  { %798 = vst [vmem:[%s1557_s2 + $0x218] sm:$0xff] %v718_v6  ;;  %v720_v20 = vadd.f32 %v640_v8, %v400_v50  ;;  %v403_v21 = vadd.f32 %v323_v7, %v83_v46  ;;  %v483_v23 = vadd.f32 %v323_v7, %v163_v44  ;;  %v404_v22 = vadd.f32 %v324_v9, %v84_v47  ;;  %v90_v50 = vld [vmem:[%s1555_s0 + $0x278] sm:$0xff] }
  0x85   :  { %799 = vst [vmem:[%s1557_s2 + $0x220] sm:$0xff] %v719_v13  ;;  %v721_v26 = vadd.f32 %v641_v15, %v401_v59  ;;  %v562_v28 = vadd.f32 %v482_v16, %v162_v40  ;;  %v484_v29 = vadd.f32 %v324_v9, %v164_v52  ;;  %v405_v31 = vadd.f32 %v325_v11, %v85_v53 }
  0x86   :  { %800 = vst [vmem:[%s1557_s2 + $0x228] sm:$0xff] %v720_v20  ;;  %v563_v30 = vadd.f32 %v483_v23, %v163_v44  ;;  %v485_v32 = vadd.f32 %v325_v11, %v165_v55  ;;  %v246_v33 = vadd.f32 %v166_v12, %v86_v10  ;;  %v247_v35 = vadd.f32 %v167_v19, %v87_v17 }
  0x87   :  { %801 = vst [vmem:[%s1557_s2 + $0x230] sm:$0xff] %v721_v26  ;;  %v642_v34 = vadd.f32 %v562_v28, %v402_v14  ;;  %v564_v36 = vadd.f32 %v484_v29, %v164_v52  ;;  %v248_v37 = vadd.f32 %v168_v24, %v88_v18  ;;  %v249_v39 = vadd.f32 %v169_v27, %v89_v25  ;;  %v170_v52 = vld [vmem:[%s1556_s1 + $0x278] sm:$0xff] }
  0x88   :  { %v643_v38 = vadd.f32 %v563_v30, %v403_v21  ;;  %v565_v40 = vadd.f32 %v485_v32, %v165_v55  ;;  %v326_v41 = vadd.f32 %v246_v33, %v86_v10  ;;  %v327_v43 = vadd.f32 %v247_v35, %v87_v17 }
  0x89   :  { %v722_v42 = vadd.f32 %v642_v34, %v402_v14  ;;  %v644_v45 = vadd.f32 %v564_v36, %v404_v22  ;;  %v328_v46 = vadd.f32 %v248_v37, %v88_v18  ;;  %v329_v47 = vadd.f32 %v249_v39, %v89_v25 }
  0x8a   :  { %v723_v44 = vadd.f32 %v643_v38, %v403_v21  ;;  %v645_v48 = vadd.f32 %v565_v40, %v405_v31  ;;  %v406_v49 = vadd.f32 %v326_v41, %v86_v10  ;;  %v486_v51 = vadd.f32 %v326_v41, %v166_v12 }
  0x8b   :  { %802 = vst [vmem:[%s1557_s2 + $0x238] sm:$0xff] %v722_v42  ;;  %v724_v53 = vadd.f32 %v644_v45, %v404_v22  ;;  %v407_v55 = vadd.f32 %v327_v43, %v87_v17  ;;  %v487_v54 = vadd.f32 %v327_v43, %v167_v19  ;;  %v408_v56 = vadd.f32 %v328_v46, %v88_v18 }
  0x8c   :  { %803 = vst [vmem:[%s1557_s2 + $0x240] sm:$0xff] %v723_v44  ;;  %v725_v57 = vadd.f32 %v645_v48, %v405_v31  ;;  %v566_v59 = vadd.f32 %v486_v51, %v166_v12  ;;  %v488_v58 = vadd.f32 %v328_v46, %v168_v24  ;;  %v409_v60 = vadd.f32 %v329_v47, %v89_v25 }
  0x8d   :  { %804 = vst [vmem:[%s1557_s2 + $0x248] sm:$0xff] %v724_v53  ;;  %v567_v61 = vadd.f32 %v487_v54, %v167_v19  ;;  %v489_v63 = vadd.f32 %v329_v47, %v169_v27  ;;  %v250_v62 = vadd.f32 %v170_v52, %v90_v50 }
  0x8e   :  { %805 = vst [vmem:[%s1557_s2 + $0x250] sm:$0xff] %v725_v57  ;;  %v646_v0 = vadd.f32 %v566_v59, %v406_v49  ;;  %v568_v1 = vadd.f32 %v488_v58, %v168_v24 }
  0x8f   :  { %v647_v3 = vadd.f32 %v567_v61, %v407_v55  ;;  %v569_v2 = vadd.f32 %v489_v63, %v169_v27  ;;  %v330_v4 = vadd.f32 %v250_v62, %v90_v50 }
  0x90   :  { %v726_v5 = vadd.f32 %v646_v0, %v406_v49  ;;  %v648_v7 = vadd.f32 %v568_v1, %v408_v56 }
  0x91   :  { %v727_v6 = vadd.f32 %v647_v3, %v407_v55  ;;  %v649_v8 = vadd.f32 %v569_v2, %v409_v60  ;;  %v410_v9 = vadd.f32 %v330_v4, %v90_v50  ;;  %v490_v11 = vadd.f32 %v330_v4, %v170_v52 }
  0x92   :  { %806 = vst [vmem:[%s1557_s2 + $0x258] sm:$0xff] %v726_v5  ;;  %v728_v10 = vadd.f32 %v648_v7, %v408_v56 }
  0x93   :  { %807 = vst [vmem:[%s1557_s2 + $0x260] sm:$0xff] %v727_v6  ;;  %v729_v12 = vadd.f32 %v649_v8, %v409_v60  ;;  %v570_v13 = vadd.f32 %v490_v11, %v170_v52 }
  0x94   :  { %808 = vst [vmem:[%s1557_s2 + $0x268] sm:$0xff] %v728_v10 }
  0x95   :  { %809 = vst [vmem:[%s1557_s2 + $0x270] sm:$0xff] %v729_v12  ;;  %v650_v15 = vadd.f32 %v570_v13, %v410_v9 }
  0x97   :  { %v730_v14 = vadd.f32 %v650_v15, %v410_v9 }
  0x99   :  { %810 = vst [vmem:[%s1557_s2 + $0x278] sm:$0xff] %v730_v14 }

</bundles_post_ra>
